<compile_context>
chip_gen: v5e
topology: v5e:2x2
jax: 0.10.0
libtpu: 0.0.40
codegen_flags: <defaults>
</compile_context>

<pallas_src>
import jax
import jax.numpy as jnp
from jax.experimental import pallas as pl
from jax.experimental.pallas import tpu as pltpu


def _round_up(v, m):
    return ((v + m - 1) // m) * m


def _linear_kernel(x_ref, wt_ref, b_ref, o_ref):
    # x_ref : (TM, 14)   block of node features
    # wt_ref: (14, E)    full transposed weight (resident across the grid)
    # b_ref : (1, E)     bias row (resident across the grid)
    # o_ref : (TM, E)    output block
    acc = jnp.dot(x_ref[...], wt_ref[...], preferred_element_type=jnp.float32)
    o_ref[...] = (acc + b_ref[...]).astype(o_ref.dtype)


def voc_node_encoder(x, w, b, *, tm=4096, out_dtype=None, vmem_limit_bytes=None):
    """y = x @ W^T + b  (PyTorch nn.Linear(14, emb_dim) forward).

    x: (N, 14) f32; w: (emb_dim, 14) f32 (PyTorch Linear layout); b: (emb_dim,) f32.
    """
    n, in_dim = x.shape
    emb_dim, k = w.shape
    assert k == in_dim, "weight inner dim must match feature dim"
    out_dtype = jnp.dtype(out_dtype) if out_dtype is not None else x.dtype
    x_bytes = jnp.dtype(x.dtype).itemsize
    o_bytes = jnp.dtype(out_dtype).itemsize

    # --- optional lane-dense output padding ---------------------------------
    # Only when emb_dim is not lane-aligned AND the extra writes are cheap
    # (<= 25% waste).  For small emb_dim (e.g. 32) masked stores beat a 4x
    # write amplification, so the exact width is kept.
    emb_p = emb_dim
    if emb_dim % 128 != 0:
        padded = _round_up(emb_dim, 128)
        if padded <= emb_dim * 1.25:
            emb_p = padded

    # Glue in plain JAX (tiny arrays, negligible traffic).
    wt = w.T                                # (14, emb_dim)
    bias = b.reshape(1, emb_dim)            # (1, emb_dim)
    if emb_p != emb_dim:
        wt = jnp.pad(wt, ((0, 0), (0, emb_p - emb_dim)))
        bias = jnp.pad(bias, ((0, 0), (0, emb_p - emb_dim)))

    # --- choose the row tile using real (8,128)-tiled VMEM footprints --------
    align = 16 if o_bytes < 4 else 8            # sublane alignment of the out tile
    lane_in = _round_up(in_dim, 128)            # 14  -> 128 lanes
    lane_out = _round_up(emb_p, 128)            # e.g. 32 -> 128 lanes
    # Resident (constant index-map) blocks are still allocated double-buffered.
    resident = 2 * (_round_up(in_dim, 8) * lane_out * 4 + 8 * lane_out * 4)
    per_row = 2 * (lane_in * x_bytes + lane_out * o_bytes)      # 2 buffers each
    budget = (vmem_limit_bytes - (2 << 20)) if vmem_limit_bytes else (14 << 20)
    tm_cap = max(align, ((budget - resident) // per_row) // align * align)
    tm = min(tm, tm_cap)
    # Give the "parallel" grid axis >= 2 steps on big graphs (v7x megacore).
    if n >= 1024:
        tm = min(tm, _round_up((n + 1) // 2, align))
    # Never tile larger than the (aligned) problem itself.
    tm = min(tm, _round_up(n, align))
    tm = max(align, (tm // align) * align)

    grid_m = pl.cdiv(n, tm)     # last block may be partial; Pallas masks it

    cost = pl.CostEstimate(
        flops=2 * n * in_dim * emb_p,
        transcendentals=0,
        bytes_accessed=(n * in_dim * x_bytes + n * emb_p * o_bytes
                        + in_dim * emb_p * 4 + emb_p * 4),
    )

    out = pl.pallas_call(
        _linear_kernel,
        out_shape=jax.ShapeDtypeStruct((n, emb_p), out_dtype),
        grid_spec=pl.GridSpec(
            grid=(grid_m,),
            in_specs=[
                pl.BlockSpec((tm, in_dim), lambda i: (i, 0)),      # x row-block
                pl.BlockSpec((in_dim, emb_p), lambda i: (0, 0)),   # W^T (resident)
                pl.BlockSpec((1, emb_p), lambda i: (0, 0)),        # bias (resident)
            ],
            out_specs=pl.BlockSpec((tm, emb_p), lambda i: (i, 0)),
        ),
        compiler_params=pltpu.CompilerParams(
            dimension_semantics=("parallel",),   # shard rows over v7x's two TCs
            vmem_limit_bytes=vmem_limit_bytes,
        ),
        cost_estimate=cost,
    )(x, wt, bias)

    if emb_p != emb_dim:
        out = out[:, :emb_dim]
    return out


if __name__ == "__main__":
    in_dim = 14
    num_nodes = 50   # not a multiple of 8 -> exercises partial-block masking

    key = jax.random.PRNGKey(0)
    kx, kw, kb, kw2, kb2 = jax.random.split(key, 5)

    bound = 1.0 / (in_dim ** 0.5)   # PyTorch nn.Linear init range
    emb_dim = 32
    w = jax.random.uniform(kw, (emb_dim, in_dim), jnp.float32, -bound, bound)
    b = jax.random.uniform(kb, (emb_dim,), jnp.float32, -bound, bound)
    x = jax.random.normal(kx, (num_nodes, in_dim), jnp.float32)
    y_ref = x @ w.T + b

    # 1) default tile: single (partial) grid step, no wrapper pad / slice
    y = jax.block_until_ready(voc_node_encoder(x, w, b))
    assert y.shape == (num_nodes, emb_dim) and y.dtype == jnp.float32
    assert jnp.allclose(y, y_ref, atol=1e-4, rtol=1e-4)

    # 2) small explicit tile: multi-step parallel grid + partial last block
    y2 = jax.block_until_ready(voc_node_encoder(x, w, b, tm=16))
    assert jnp.allclose(y2, y_ref, atol=1e-4, rtol=1e-4)

    # 3) bf16 output (cheapest bandwidth win; compute still f32 on the MXU)
    y3 = jax.block_until_ready(voc_node_encoder(x, w, b, out_dtype=jnp.bfloat16))
    assert y3.dtype == jnp.bfloat16
    assert jnp.allclose(y3.astype(jnp.float32), y_ref, atol=5e-2, rtol=5e-2)

    # 4) lane-dense padded-output path (emb_dim=220 -> 256 lanes, sliced back)
    emb_dim2 = 220
    w2 = jax.random.uniform(kw2, (emb_dim2, in_dim), jnp.float32, -bound, bound)
    b2 = jax.random.uniform(kb2, (emb_dim2,), jnp.float32, -bound, bound)
    y4_ref = x @ w2.T + b2
    y4 = jax.block_until_ready(voc_node_encoder(x, w2, b2))
    assert y4.shape == (num_nodes, emb_dim2)
    assert jnp.allclose(y4, y4_ref, atol=1e-4, rtol=1e-4)

    print("KERNEL_OK")
</pallas_src>

<mosaic_0001>
module attributes {stable_mosaic.version = 11 : i64} {
  func.func @_linear_kernel(%arg0: i32, %arg1: memref<56x14xf32, #tpu.memory_space<vmem>>, %arg2: memref<14x32xf32, #tpu.memory_space<vmem>>, %arg3: memref<1x32xf32, #tpu.memory_space<vmem>>, %arg4: memref<56x32xf32, #tpu.memory_space<vmem>>) attributes {dimension_semantics = [#tpu.dimension_semantics<parallel>], iteration_bounds = array<i64: 1>, scalar_prefetch = 0 : i64, scratch_operands = 0 : i64, tpu.core_type = #tpu.core_type<tc>, window_params = [{transform_indices = @transform_0, window_bounds = array<i64: 56, 14>}, {pipeline_mode = #tpu.pipeline_mode<synchronous>, transform_indices = @transform_1, window_bounds = array<i64: 14, 32>}, {pipeline_mode = #tpu.pipeline_mode<synchronous>, transform_indices = @transform_2, window_bounds = array<i64: 1, 32>}, {transform_indices = @transform_3, window_bounds = array<i64: 56, 32>}]} {
    %c0 = arith.constant 0 : index
    %c0_0 = arith.constant 0 : index
    %0 = vector.load %arg1[%c0, %c0_0] : memref<56x14xf32, #tpu.memory_space<vmem>>, vector<56x14xf32>
    %c0_1 = arith.constant 0 : index
    %c0_2 = arith.constant 0 : index
    %1 = vector.load %arg2[%c0_1, %c0_2] : memref<14x32xf32, #tpu.memory_space<vmem>>, vector<14x32xf32>
    %cst = arith.constant dense<0.000000e+00> : vector<56x32xf32>
    %2 = tpu.matmul %0, %1, %cst {dimension_numbers = #tpu.dot_dimension_numbers<[1], [0], [0], [1], [0, 0, 1, 1], [], []>} : vector<56x14xf32>, vector<14x32xf32>, vector<56x32xf32> -> vector<56x32xf32>
    %c0_3 = arith.constant 0 : index
    %c0_4 = arith.constant 0 : index
    %3 = vector.load %arg3[%c0_3, %c0_4] : memref<1x32xf32, #tpu.memory_space<vmem>>, vector<1x32xf32>
    %4 = vector.broadcast %3 : vector<1x32xf32> to vector<56x32xf32>
    %5 = arith.addf %2, %4 : vector<56x32xf32>
    %c0_5 = arith.constant 0 : index
    %c0_6 = arith.constant 0 : index
    %6 = vector.load %arg4[%c0_5, %c0_6] : memref<56x32xf32, #tpu.memory_space<vmem>>, vector<56x32xf32>
    tpu.vector_store %arg4[%c0_5, %c0_6], %5 {strides = array<i32>} : memref<56x32xf32, #tpu.memory_space<vmem>>, vector<56x32xf32>,
    return
  }
  func.func @transform_0(%arg0: i32) -> (i32, i32) {
    %c0_i32 = arith.constant 0 : i32
    %c0_i32_0 = arith.constant 0 : i32
    return %arg0, %c0_i32 : i32, i32
  }
  func.func @transform_1(%arg0: i32) -> (i32, i32) {
    %c0_i32 = arith.constant 0 : i32
    %c0_i32_0 = arith.constant 0 : i32
    %c0_i32_1 = arith.constant 0 : i32
    return %c0_i32, %c0_i32_0 : i32, i32
  }
  func.func @transform_2(%arg0: i32) -> (i32, i32) {
    %c0_i32 = arith.constant 0 : i32
    %c0_i32_0 = arith.constant 0 : i32
    %c0_i32_1 = arith.constant 0 : i32
    return %c0_i32, %c0_i32_0 : i32, i32
  }
  func.func @transform_3(%arg0: i32) -> (i32, i32) {
    %c0_i32 = arith.constant 0 : i32
    %c0_i32_0 = arith.constant 0 : i32
    return %arg0, %c0_i32 : i32, i32
  }
}

</mosaic_0001>

<bundles_post_ra>
// kernel: tpu_custom_call.1
= control target key start
LH: loop header
LB: loop body
LE: loop exit
PB: predicated region body
PF: predicated region fallthrough
CT: control target
= control target key end

     0   :  { %vm49_vm0 = vcmask 1045504   ;;  %vm27_vm1 = vcmask 113664   ;;  %vm91_vm2 = vcmask 261120   ;;  %s203_s1 = inlined_call_operand.vmem [shape: f32[14,32], index: 1, kind: input, shape index: {}]   ;;  %s204_s0 = inlined_call_operand.vmem [shape: f32[50,14], index: 0, kind: input, shape index: {}]   ;;  %s205_s2 = inlined_call_operand.vmem [shape: f32[1,32], index: 2, kind: input, shape index: {}]   ;;  %s206_s3 = inlined_call_operand.vmem [shape: f32[50,32], index: 3, kind: output, shape index: {}]  }
   0x1   :  { %v22_v0 = vld [vmem:[%s203_s1 + $0x8] sm:$0x3f]  ;;  %v21_v1 = vld [vmem:[%s203_s1] sm:$0xff]  ;;  %v16_v4 = vld [vmem:[%s204_s0 + $0x10] sm:$0xff] }
   0x2   :  { %113 = vmatpush.msk.msra.mxu3 %vm49_vm0, %v22_v0  ;;  %v19_v2 = vld [vmem:[%s204_s0 + $0x28] sm:$0xff]  ;;  %103 = vmatpush.msk.msra.mxu0 %vm49_vm0, %v22_v0  ;;  %v14_v3 = vld [vmem:[%s204_s0] sm:$0xff]  ;;  %v20_v6 = vld [vmem:[%s204_s0 + $0x30] sm:$0xff] }
   0x3   :  { %111 = vmatpush.msk.msra.mxu1 %vm49_vm0, %v22_v0  ;;  %112 = vmatpush.msk.msra.mxu2 %vm49_vm0, %v22_v0  ;;  %v18_v5 = vld [vmem:[%s204_s0 + $0x20] sm:$0xff]  ;;  %v15_v7 = vld [vmem:[%s204_s0 + $0x8] sm:$0xff]  ;;  %v17_v8 = vld [vmem:[%s204_s0 + $0x18] sm:$0xff] }
   0x4   :  { %116 = vmatpush.msra.mxu3 %v21_v1  ;;  %68 = vmatpush.msra.mxu0 %v21_v1  ;;  %v117_v9 = vld [vmem:[%s205_s2] ss:$0 sm:$0xff] }
   0x5   :  { %109 = vmatmul.msk.f32.vlgmr.msra.gmra.mxu3 %vm27_vm1, %v19_v2  ;;  %114 = vmatpush.msra.mxu1 %v21_v1 }
   0x6   :  { %104 = vmatmul.msk.f32.vlgmr.msra.gmra.mxu0 %vm27_vm1, %v14_v3  ;;  %106 = vmatmul.msk.f32.vlgmr.msra.gmra.mxu1 %vm27_vm1, %v16_v4 }
   0x7   :  { %115 = vmatpush.msra.mxu2 %v21_v1 }
   0x8   :  { %108 = vmatmul.msk.f32.vlgmr.msra.gmra.mxu2 %vm27_vm1, %v18_v5 }
   0xd   :  { %110 = vmatmul.msk.f32.gmra.mxu3 %vm27_vm1, %v20_v6 }
   0xe   :  { %105 = vmatmul.msk.f32.gmra.mxu0 %vm27_vm1, %v15_v7  ;;  %107 = vmatmul.msk.f32.gmra.mxu1 %vm27_vm1, %v17_v8 }
  0x83   :  { %v70_v10 = vpop.f32.mrf.mxu0  ;;  %v76_v11 = vpop.f32.mrf.mxu1 }
  0x84   :  { %v71_v12 = vadd.f32 %v117_v9, %v70_v10  ;;  %v77_v13 = vadd.f32 %v117_v9, %v76_v11 }
  0x86   :  { %92 = vst.msk [vmem:[%s206_s3] sm:$0xff] %vm91_vm2, %v71_v12 }
  0x87   :  { %94 = vst.msk [vmem:[%s206_s3 + $0x10] sm:$0xff] %vm91_vm2, %v77_v13 }
  0x88   :  { %v85_v14 = vpop.f32.mrf.mxu3 }
  0x89   :  { %v86_v15 = vadd.f32 %v117_v9, %v85_v14 }
  0x8b   :  { %97 = vst.msk [vmem:[%s206_s3 + $0x28] sm:$0xff] %vm91_vm2, %v86_v15  ;;  %v73_v16 = vpop.f32.mrf.mxu0  ;;  %v79_v17 = vpop.f32.mrf.mxu1 }
  0x8c   :  { %v74_v18 = vadd.f32 %v117_v9, %v73_v16  ;;  %v80_v19 = vadd.f32 %v117_v9, %v79_v17  ;;  %v82_v20 = vpop.f32.mrf.mxu2 }
  0x8d   :  { %v83_v21 = vadd.f32 %v117_v9, %v82_v20 }
  0x8e   :  { %93 = vst.msk [vmem:[%s206_s3 + $0x8] sm:$0xff] %vm91_vm2, %v74_v18 }
  0x8f   :  { %95 = vst.msk [vmem:[%s206_s3 + $0x18] sm:$0xff] %vm91_vm2, %v80_v19 }
  0x90   :  { %96 = vst.msk [vmem:[%s206_s3 + $0x20] sm:$0xff] %vm91_vm2, %v83_v21  ;;  %v88_v22 = vpop.f32.mrf.mxu3 }
  0x91   :  { %v89_v23 = vadd.f32 %v117_v9, %v88_v22 }
  0x93   :  { %98 = vst.msk [vmem:[%s206_s3 + $0x30] sm:$0xff] %vm91_vm2, %v89_v23 }

</bundles_post_ra>
